<compile_context>
chip_gen: v7x
topology: tpu7x:2x2x1
jax: 0.10.0
libtpu: 0.0.40
codegen_flags: <defaults>
</compile_context>

<pallas_src>
import jax
import jax.numpy as jnp
from jax import lax
from jax.experimental import pallas as pl
from jax.experimental.pallas import tpu as pltpu


def _choose_batch_block(nb, row_bytes, budget_bytes=2 << 20, min_steps=2):
    """Largest divisor TB of nb whose (TB, T, H, D*C) tile fits the byte budget,
    keeping at least `min_steps` grid steps when possible (megacore on v7x,
    pipeline overlap)."""
    best = 1
    for tb in range(1, nb + 1):
        if nb % tb:
            continue
        steps = nb // tb
        if tb * row_bytes <= budget_bytes and (steps >= min_steps or nb < min_steps):
            best = tb
    return best


def temporal_shift_pallas(x, n_segment=3, n_div=8):
    """TemporalShift forward. x: (nt, num_heads, d, c) -> same shape/dtype."""
    nt, H, D, C = x.shape
    assert nt % n_segment == 0, "nt must be divisible by n_segment"
    nb = nt // n_segment
    T = n_segment
    fold = (C * H) // n_div          # fold on the flattened (head*c) channel axis
    DC = D * C                       # lane-dense trailing dim (multiple of 128 here)

    # Free, contiguous reshape: (nt, H, D, C) -> (nb, T, H, D*C).
    xf = x.reshape(nb, T, H, DC)

    itemsize = jnp.dtype(x.dtype).itemsize
    row_bytes = T * H * DC * itemsize          # one batch row (all segments)
    TB = _choose_batch_block(nb, row_bytes)

    def kernel(x_ref, o_ref):
        # x_ref / o_ref: (TB, T, H, D*C) in VMEM.
        # Flattened channel index chan = h*C + c, with c = lane % C; this is
        # exactly the channel ordering of the PyTorch permute(0,1,2,4,3).view().
        h_idx = lax.broadcasted_iota(jnp.int32, (H, DC), 0)
        c_idx = lax.broadcasted_iota(jnp.int32, (H, DC), 1) % C
        chan = h_idx * C + c_idx
        mask_fwd = chan < fold                                        # take from t+1
        mask_bwd = jnp.logical_and(chan >= fold, chan < 2 * fold)     # take from t-1
        zero = jnp.zeros((), x_ref.dtype)

        # T == n_segment is small: fully unrolled, boundaries handled statically.
        for t in range(T):
            cur = x_ref[:, t]
            if t > 0:
                rest = jnp.where(mask_bwd, x_ref[:, t - 1], cur)
            else:
                rest = jnp.where(mask_bwd, zero, cur)                 # first segment -> 0
            if t + 1 < T:
                out = jnp.where(mask_fwd, x_ref[:, t + 1], rest)
            else:
                out = jnp.where(mask_fwd, zero, rest)                 # last segment -> 0
            o_ref[:, t] = out

    blk = (TB, T, H, DC)
    spec = pl.BlockSpec(blk, lambda i: (i, 0, 0, 0))

    out = pl.pallas_call(
        kernel,
        out_shape=jax.ShapeDtypeStruct(xf.shape, xf.dtype),
        grid_spec=pltpu.PrefetchScalarGridSpec(
            num_scalar_prefetch=0,
            grid=(nb // TB,),
            in_specs=[spec],
            out_specs=spec,
        ),
        compiler_params=pltpu.CompilerParams(
            dimension_semantics=("parallel",),
            vmem_limit_bytes=32 * 1024 * 1024,   # explicit budget, safe on v5e/v6e/v7x
        ),
    )(xf)

    return out.reshape(nt, H, D, C)


def temporal_shift_ref(x, n_segment=3, n_div=8):
    """Pure-JAX transcription of the PyTorch forward, for verification."""
    nt, num_heads, d, c = x.shape
    n_batch = nt // n_segment
    fold = c * num_heads // n_div
    xr = x.reshape(n_batch, n_segment, num_heads, d, c)
    xp = jnp.transpose(xr, (0, 1, 2, 4, 3)).reshape(
        n_batch, n_segment, num_heads * c, d
    )
    out = jnp.zeros_like(xp)
    out = out.at[:, :-1, :fold].set(xp[:, 1:, :fold])
    out = out.at[:, 1:, fold:2 * fold].set(xp[:, :-1, fold:2 * fold])
    out = out.at[:, :, 2 * fold:].set(xp[:, :, 2 * fold:])
    out = jnp.transpose(
        out.reshape(n_batch, n_segment, num_heads, c, d), (0, 1, 2, 4, 3)
    )
    return out.reshape(nt, num_heads, d, c)


if __name__ == "__main__":
    n_segment = 3
    n_div = 8
    n_batch = 2
    num_heads = 4
    d = 16
    c = 16
    nt = n_batch * n_segment  # 6

    key = jax.random.PRNGKey(0)
    x = jax.random.normal(key, (nt, num_heads, d, c), dtype=jnp.float32)

    out = temporal_shift_pallas(x, n_segment=n_segment, n_div=n_div)
    out = jax.block_until_ready(out)

    ref = temporal_shift_ref(x, n_segment=n_segment, n_div=n_div)
    assert out.shape == x.shape and out.dtype == x.dtype
    assert jnp.allclose(out, ref, atol=1e-6), "mismatch vs reference"

    print("KERNEL_OK")
</pallas_src>

<mosaic_0001>
module attributes {stable_mosaic.version = 11 : i64} {
  func.func @kernel(%arg0: i32, %arg1: memref<1x3x4x256xf32, #tpu.memory_space<vmem>>, %arg2: memref<1x3x4x256xf32, #tpu.memory_space<vmem>>) attributes {dimension_semantics = [#tpu.dimension_semantics<parallel>], iteration_bounds = array<i64: 2>, scalar_prefetch = 0 : i64, scratch_operands = 0 : i64, tpu.core_type = #tpu.core_type<tc>, window_params = [{transform_indices = @transform_0, window_bounds = array<i64: 1, 3, 4, 256>}, {transform_indices = @transform_1, window_bounds = array<i64: 1, 3, 4, 256>}]} {
    %0 = tpu.iota {dimensions = array<i32: 0>} : vector<4x256xi32>
    %1 = tpu.iota {dimensions = array<i32: 1>} : vector<4x256xi32>
    %c16_i32 = arith.constant 16 : i32
    %c0_i32 = arith.constant 0 : i32
    %2 = arith.cmpi eq, %c16_i32, %c0_i32 : i32
    %c1_i32 = arith.constant 1 : i32
    %3 = arith.select %2, %c1_i32, %c16_i32 : i32
    %4 = vector.broadcast %3 : i32 to vector<4x256xi32>
    %5 = arith.remsi %1, %4 : vector<4x256xi32>
    %c0_i32_0 = arith.constant 0 : i32
    %6 = vector.broadcast %c0_i32_0 : i32 to vector<4x256xi32>
    %7 = arith.cmpi ne, %5, %6 : vector<4x256xi32>
    %c0_i32_1 = arith.constant 0 : i32
    %8 = vector.broadcast %c0_i32_1 : i32 to vector<4x256xi32>
    %9 = arith.cmpi slt, %5, %8 : vector<4x256xi32>
    %c0_i32_2 = arith.constant 0 : i32
    %10 = arith.cmpi slt, %3, %c0_i32_2 : i32
    %11 = vector.broadcast %10 : i1 to vector<4x256xi1>
    %12 = vector.broadcast %11 : vector<4x256xi1> to vector<4x256xi1>
    %13 = arith.xori %9, %12 : vector<4x256xi1>
    %14 = arith.andi %13, %7 : vector<4x256xi1>
    %15 = vector.broadcast %3 : i32 to vector<4x256xi32>
    %16 = arith.addi %5, %15 : vector<4x256xi32>
    %17 = arith.select %14, %16, %5 : vector<4x256xi1>, vector<4x256xi32>
    %c16_i32_3 = arith.constant 16 : i32
    %18 = vector.broadcast %c16_i32_3 : i32 to vector<4x256xi32>
    %19 = arith.muli %0, %18 : vector<4x256xi32>
    %20 = arith.addi %19, %17 : vector<4x256xi32>
    %c8_i32 = arith.constant 8 : i32
    %21 = vector.broadcast %c8_i32 : i32 to vector<4x256xi32>
    %22 = arith.cmpi slt, %20, %21 : vector<4x256xi32>
    %c8_i32_4 = arith.constant 8 : i32
    %23 = vector.broadcast %c8_i32_4 : i32 to vector<4x256xi32>
    %24 = arith.cmpi sge, %20, %23 : vector<4x256xi32>
    %c16_i32_5 = arith.constant 16 : i32
    %25 = vector.broadcast %c16_i32_5 : i32 to vector<4x256xi32>
    %26 = arith.cmpi slt, %20, %25 : vector<4x256xi32>
    %27 = arith.andi %24, %26 : vector<4x256xi1>
    %c0 = arith.constant 0 : index
    %c0_6 = arith.constant 0 : index
    %c0_7 = arith.constant 0 : index
    %c0_8 = arith.constant 0 : index
    %28 = vector.load %arg1[%c0, %c0_6, %c0_7, %c0_8] : memref<1x3x4x256xf32, #tpu.memory_space<vmem>>, vector<1x1x4x256xf32>
    %29 = vector.shape_cast %28 : vector<1x1x4x256xf32> to vector<1x4x256xf32>
    %cst = arith.constant 0.000000e+00 : f32
    %30 = vector.shape_cast %27 : vector<4x256xi1> to vector<1x4x256xi1>
    %31 = vector.broadcast %cst : f32 to vector<1x4x256xf32>
    %32 = arith.select %30, %31, %29 : vector<1x4x256xi1>, vector<1x4x256xf32>
    %c0_9 = arith.constant 0 : index
    %c1 = arith.constant 1 : index
    %c0_10 = arith.constant 0 : index
    %c0_11 = arith.constant 0 : index
    %33 = vector.load %arg1[%c0_9, %c1, %c0_10, %c0_11] : memref<1x3x4x256xf32, #tpu.memory_space<vmem>>, vector<1x1x4x256xf32>
    %34 = vector.shape_cast %33 : vector<1x1x4x256xf32> to vector<1x4x256xf32>
    %35 = vector.shape_cast %22 : vector<4x256xi1> to vector<1x4x256xi1>
    %36 = arith.select %35, %34, %32 : vector<1x4x256xi1>, vector<1x4x256xf32>
    %c0_12 = arith.constant 0 : index
    %c0_13 = arith.constant 0 : index
    %c0_14 = arith.constant 0 : index
    %c0_15 = arith.constant 0 : index
    %37 = vector.load %arg2[%c0_12, %c0_13, %c0_14, %c0_15] : memref<1x3x4x256xf32, #tpu.memory_space<vmem>>, vector<1x1x4x256xf32>
    %38 = vector.shape_cast %37 : vector<1x1x4x256xf32> to vector<1x4x256xf32>
    %39 = vector.shape_cast %36 : vector<1x4x256xf32> to vector<1x1x4x256xf32>
    tpu.vector_store %arg2[%c0_12, %c0_13, %c0_14, %c0_15], %39 {strides = array<i32>} : memref<1x3x4x256xf32, #tpu.memory_space<vmem>>, vector<1x1x4x256xf32>,
    %c0_16 = arith.constant 0 : index
    %c1_17 = arith.constant 1 : index
    %c0_18 = arith.constant 0 : index
    %c0_19 = arith.constant 0 : index
    %40 = vector.load %arg1[%c0_16, %c1_17, %c0_18, %c0_19] : memref<1x3x4x256xf32, #tpu.memory_space<vmem>>, vector<1x1x4x256xf32>
    %41 = vector.shape_cast %40 : vector<1x1x4x256xf32> to vector<1x4x256xf32>
    %c0_20 = arith.constant 0 : index
    %c0_21 = arith.constant 0 : index
    %c0_22 = arith.constant 0 : index
    %c0_23 = arith.constant 0 : index
    %42 = vector.load %arg1[%c0_20, %c0_21, %c0_22, %c0_23] : memref<1x3x4x256xf32, #tpu.memory_space<vmem>>, vector<1x1x4x256xf32>
    %43 = vector.shape_cast %42 : vector<1x1x4x256xf32> to vector<1x4x256xf32>
    %44 = vector.shape_cast %27 : vector<4x256xi1> to vector<1x4x256xi1>
    %45 = arith.select %44, %43, %41 : vector<1x4x256xi1>, vector<1x4x256xf32>
    %c0_24 = arith.constant 0 : index
    %c2 = arith.constant 2 : index
    %c0_25 = arith.constant 0 : index
    %c0_26 = arith.constant 0 : index
    %46 = vector.load %arg1[%c0_24, %c2, %c0_25, %c0_26] : memref<1x3x4x256xf32, #tpu.memory_space<vmem>>, vector<1x1x4x256xf32>
    %47 = vector.shape_cast %46 : vector<1x1x4x256xf32> to vector<1x4x256xf32>
    %48 = vector.shape_cast %22 : vector<4x256xi1> to vector<1x4x256xi1>
    %49 = arith.select %48, %47, %45 : vector<1x4x256xi1>, vector<1x4x256xf32>
    %c0_27 = arith.constant 0 : index
    %c1_28 = arith.constant 1 : index
    %c0_29 = arith.constant 0 : index
    %c0_30 = arith.constant 0 : index
    %50 = vector.load %arg2[%c0_27, %c1_28, %c0_29, %c0_30] : memref<1x3x4x256xf32, #tpu.memory_space<vmem>>, vector<1x1x4x256xf32>
    %51 = vector.shape_cast %50 : vector<1x1x4x256xf32> to vector<1x4x256xf32>
    %52 = vector.shape_cast %49 : vector<1x4x256xf32> to vector<1x1x4x256xf32>
    tpu.vector_store %arg2[%c0_27, %c1_28, %c0_29, %c0_30], %52 {strides = array<i32>} : memref<1x3x4x256xf32, #tpu.memory_space<vmem>>, vector<1x1x4x256xf32>,
    %c0_31 = arith.constant 0 : index
    %c2_32 = arith.constant 2 : index
    %c0_33 = arith.constant 0 : index
    %c0_34 = arith.constant 0 : index
    %53 = vector.load %arg1[%c0_31, %c2_32, %c0_33, %c0_34] : memref<1x3x4x256xf32, #tpu.memory_space<vmem>>, vector<1x1x4x256xf32>
    %54 = vector.shape_cast %53 : vector<1x1x4x256xf32> to vector<1x4x256xf32>
    %c0_35 = arith.constant 0 : index
    %c1_36 = arith.constant 1 : index
    %c0_37 = arith.constant 0 : index
    %c0_38 = arith.constant 0 : index
    %55 = vector.load %arg1[%c0_35, %c1_36, %c0_37, %c0_38] : memref<1x3x4x256xf32, #tpu.memory_space<vmem>>, vector<1x1x4x256xf32>
    %56 = vector.shape_cast %55 : vector<1x1x4x256xf32> to vector<1x4x256xf32>
    %57 = vector.shape_cast %27 : vector<4x256xi1> to vector<1x4x256xi1>
    %58 = arith.select %57, %56, %54 : vector<1x4x256xi1>, vector<1x4x256xf32>
    %cst_39 = arith.constant 0.000000e+00 : f32
    %59 = vector.shape_cast %22 : vector<4x256xi1> to vector<1x4x256xi1>
    %60 = vector.broadcast %cst_39 : f32 to vector<1x4x256xf32>
    %61 = arith.select %59, %60, %58 : vector<1x4x256xi1>, vector<1x4x256xf32>
    %c0_40 = arith.constant 0 : index
    %c2_41 = arith.constant 2 : index
    %c0_42 = arith.constant 0 : index
    %c0_43 = arith.constant 0 : index
    %62 = vector.load %arg2[%c0_40, %c2_41, %c0_42, %c0_43] : memref<1x3x4x256xf32, #tpu.memory_space<vmem>>, vector<1x1x4x256xf32>
    %63 = vector.shape_cast %62 : vector<1x1x4x256xf32> to vector<1x4x256xf32>
    %64 = vector.shape_cast %61 : vector<1x4x256xf32> to vector<1x1x4x256xf32>
    tpu.vector_store %arg2[%c0_40, %c2_41, %c0_42, %c0_43], %64 {strides = array<i32>} : memref<1x3x4x256xf32, #tpu.memory_space<vmem>>, vector<1x1x4x256xf32>,
    return
  }
  func.func @transform_0(%arg0: i32) -> (i32, i32, i32, i32) {
    %c0_i32 = arith.constant 0 : i32
    %c0_i32_0 = arith.constant 0 : i32
    %c0_i32_1 = arith.constant 0 : i32
    %c0_i32_2 = arith.constant 0 : i32
    return %arg0, %c0_i32, %c0_i32_0, %c0_i32_1 : i32, i32, i32, i32
  }
  func.func @transform_1(%arg0: i32) -> (i32, i32, i32, i32) {
    %c0_i32 = arith.constant 0 : i32
    %c0_i32_0 = arith.constant 0 : i32
    %c0_i32_1 = arith.constant 0 : i32
    %c0_i32_2 = arith.constant 0 : i32
    return %arg0, %c0_i32, %c0_i32_0, %c0_i32_1 : i32, i32, i32, i32
  }
}

</mosaic_0001>

<bundles_post_ra>
// kernel: tpu_custom_call.1
= control target key start
LH: loop header
LB: loop body
LE: loop exit
PB: predicated region body
PF: predicated region fallthrough
CT: control target
= control target key end

     0   :  { %6 = vsyncpa [#allocation3], 0  ;;  %s679_s0 = inlined_call_operand.hbm [shape: f32[2,3,4,256], index: 0, kind: input, shape index: {}]   ;;  %s680_s1 = inlined_call_operand.hbm [shape: f32[2,3,4,256], index: 1, kind: output, shape index: {}]  }
   0x1   :  { %8 = vsyncpa [#allocation3 + $0x1], 0 }
   0x2   :  { %9 = vsyncpa [#allocation4], 0 }
   0x3   :  { %11 = vsyncpa [#allocation4 + $0x1], 0  ;;  %s507_s6 = smov 0   ;;  %s509_s7 = smov 0  }
   0x4   :  { %s511_s8 = smov 0   ;;  %s513_s9 = smov 0  }
   0x5 LB: > { %s528_s10 = sadd.s32 4294967295, %s489_s9   ;;  %s321_s11 = sadd.s32 4294967294, %s489_s9   ;;  %s489_s9 = sphi %s513_s9, %s694_s9   ;;  %s485_s8 = sphi %s511_s8, %s693_s8   ;;  %s481_s7 = sphi %s509_s7, %s692_s7   ;;  %s477_s6 = sphi %s507_s6, %s691_s6  }
   0x6   : > { %s532_s12 = sadd.s32 1, %s489_s9   ;;  %s24_s13 = sadd.s32 1, %s485_s8 }
   0x7   : > { %s21_s14 = ssub.s32 %s489_s9, %s532_s12  ;;  %p31_p0 = scmp.ne.s32.totalorder %s485_s8, %s481_s7 }
   0x8   : > { %p22_p1 = scmp.eq.s32.totalorder %s21_s14, 0  ;;  %p32_p2 = scmp.eq.s32.totalorder %s489_s9, 0 }
   0x9   : > { %p37_p3 = scmp.ne.s32.totalorder %s481_s7, %s477_s6  ;;  %p38_p4 = scmp.eq.s32.totalorder %s528_s10, 0 }
   0xa   : > { %s544_s15 = scalar_select %p22_p1, %s485_s8, %s24_s13  }
   0xb   : > { %p33_p5 = por %p32_p2, %p31_p0  ;;  %p546_p6 = por %p38_p4, %p37_p3 }
   0xc   : > { %p61_p7 = scmp.eq.s32.totalorder %s528_s10, 1  ;;  %p67_p8 = scmp.eq.s32.totalorder %s321_s11, 1 }
   0xd   : > { %p352_p10 = scmp.lt.s32.totalorder %s489_s9, 2  ;;  %s87_s19 = sand.u32 1, %s485_s8  }
   0xe   : > { %p553_p11 = por %p61_p7, %p31_p0  ;;  %p557_p12 = por %p67_p8, %p37_p3 }
   0xf   : > { %s337_s20 = smul.u32 384, %s489_s9  ;;  %p568_p13 = pnand %p352_p10, %p33_p5 }
  0x10   : > { %s683_s17 = scalar_select %p553_p11, 1, 0 }
  0x11   : > { %s684_s18 = scalar_select %p557_p12, 1, 0 }
  0x12   : > { %s336_s21 = smul.u32 24, %s87_s19  ;;  %s566_s24 = scalar_lea.hbm %s679_s0, %s337_s20 }
  0x13   : > { %s574_s28 = scalar_lea.sflag [#allocation3], %s87_s19  ;;  %s393_s29 = scalar_lea.hbm %s566_s24, 384 }
  0x14   : > { %s91_s26 = scalar_lea.vmem [#allocation2], %s336_s21  ;;  %p394_p0 = scmp.ne.s32.totalorder %s566_s24, %s393_s29 }
  0x15   : > { %s98_s27 = sshll.u32 %s91_s26, 4  ;;  %p395_p1 = pneg %p568_p13  ;;  %s572_s27 = int_to_ptr.vmem [resolvable:$true] %s98_s27 }
  0x16   : > { %s398_s3 = scalar_lea.hbm %s679_s0, 768  ;;  %p399_p4 = scmp.lt.u32.totalorder %s566_s24, %s679_s0 }
  0x17   : > { %p396_p2 = pnand %p395_p1, %p394_p0  ;;  %p400_p5 = scmp.lt.u32.totalorder %s398_s3, %s393_s29 }
  0x18   : > { %p402_p8 = scmp.lt.u32.totalorder %s393_s29, %s566_s24 }
  0x19   : > { %p397_p3 = pneg %p396_p2  ;;  %p401_p7 = por %p400_p5, %p399_p4 }
  0x1b   : > { %p403_p10 = por %p402_p8, %p401_p7 }
  0x1d   : > { %p404_p9 = pnand %p403_p10, %p397_p3 }
  0x1f   : > { %407 = shalt.err (!%p404_p9)
}
  0x20   : > { %s408_s11 = scalar_lea.vmem %s572_s27, 384  ;;  %s491_s13 = smov [#allocation2]  }
  0x21   : > { %p409_p0 = scmp.ne.s32.totalorder %s572_s27, %s408_s11  ;;  %s413_s14 = sshll.u32 %s491_s13, 4  ;;  %s414_s14 = int_to_ptr.vmem [resolvable:$false] %s413_s14 }
  0x22   : > { %s415_s19 = scalar_lea.vmem %s414_s14, 768  ;;  %p416_p11 = scmp.lt.s32.totalorder %s572_s27, %s414_s14 }
  0x23   : > { %p411_p2 = pnand %p409_p0, %p395_p1  ;;  %p417_p4 = scmp.lt.s32.totalorder %s415_s19, %s408_s11 }
  0x25   : > { %p412_p12 = pneg %p411_p2  ;;  %p418_p5 = por %p417_p4, %p416_p11 }
  0x27   : > { %p419_p7 = pnand %p418_p5, %p412_p12 }
  0x29   : > { %422 = shalt.err (!%p419_p7)
}
  0x2a   : > { %s492_s20 = smov 128   ;;  %s493_s21 = smov 8  }
  0x2b   : > { %347 = dma.hbm_to_vmem [thread:$0]  (!%p568_p13), %s566_s24, 384, %s572_s27, %s574_s28, %s492_s20, %s492_s20, %s493_s21  }
  0x2c   : > { %p325_p9 = scmp.ge.s32.totalorder %s489_s9, 1  ;;  %p106_p1 = scmp.lt.s32.totalorder %s489_s9, 3 }
  0x2e   : > { %p107_p3 = pnand %p325_p9, %p106_p1 }
  0x2f   : > { %s605_s22 = sand.u32 (!%p107_p3), 1, %s481_s7  }
  0x30   : > { %110 = sbr.rel (%p107_p3) target bundleno = 88 (0x58), region = 24  ;;  %s113_s26 = scalar_lea.sflag (!%p107_p3), [#allocation3], %s605_s22 }
  0x31   : > { %s338_s23 = smul.u32 (!%p107_p3), 24, %s605_s22 }
  0x33   : > { %s116_s29 = scalar_lea.vmem (!%p107_p3), [#allocation2], %s338_s23 }
  0x37   : > { %468 = dma.done.wait (%p546_p6), %s113_s26, 384  }
  0x38   : > { %470 = vsyncadd (%p546_p6), %s113_s26, 4294966912  ;;  %v135_v0 = vlaneseq  ;;  %v175_v8 = vld [vmem:[%s116_s29] sm:$0xff]  ;;  %v326_v9 = vld [vmem:[%s116_s29 + $0x8] sm:$0xff]  ;;  %s134_s16 = scalar_lea.vmem [#allocation5], %s338_s23  ;;  %s339_s25 = smul.u32 384, %s528_s10 }
  0x39   : > { %v328_v10 = vld [vmem:[%s116_s29 + $0x10] sm:$0xff]  ;;  %v177_v13 = vcombine.high %v175_v8, %v175_v8  ;;  %v184_v14 = vcombine.high %v326_v9, %v326_v9  ;;  %s248_s24 = sshll.u32 %s134_s16, 4  ;;  %s235_s30 = scalar_lea.sflag [#allocation4], %s605_s22  ;;  %s627_s24 = int_to_ptr.vmem [resolvable:$true] %s248_s24 }
  0x3a   : > { %v136_v1 = vshrl.u32 %v135_v0, 7  ;;  %v138_v2 = vand.u32 127, %v135_v0  ;;  %v206_v15 = vcombine.high %v328_v10, %v328_v10  ;;  %s635_s28 = scalar_lea.hbm %s680_s1, %s339_s25  ;;  %s423_s2 = scalar_lea.vmem %s627_s24, 384 }
  0x3b   : > { %p424_p6 = scmp.ne.s32.totalorder %s627_s24, %s423_s2  ;;  %p688_p11 = scmp.ne.s32.totalorder %s683_s17, 0 }
  0x3c   : > { %v139_v3 = vadd.s32 128, %v138_v2  ;;  %v144_v4 = vand.u32 15, %v138_v2  ;;  %v164_v5 = vmul.u32 16, %v136_v1  ;;  %s494_s3 = smov [#allocation5]  }
  0x3d   : > { %p425_p12 = pnand %p424_p6, %p688_p11  ;;  %s427_s4 = sshll.u32 %s494_s3, 4  ;;  %s428_s4 = int_to_ptr.vmem [resolvable:$false] %s427_s4 }
  0x3e   : > { %v151_v6 = vand.u32 15, %v139_v3  ;;  %v165_v7 = vadd.s32 %v164_v5, %v144_v4  ;;  %s429_s5 = scalar_lea.vmem %s428_s4, 768  ;;  %p430_p8 = scmp.lt.s32.totalorder %s627_s24, %s428_s4 }
  0x3f   : > { %p426_p13 = pneg %p425_p12  ;;  %p431_p10 = scmp.lt.s32.totalorder %s429_s5, %s423_s2 }
  0x40   : > { %v166_v11 = vadd.s32 %v164_v5, %v151_v6  ;;  %vm167_vm0 = vcmp.lt.s32.totalorder %v165_v7, 8  ;;  %vm169_vm1 = vcmp.ge.s32.totalorder %v165_v7, 8  ;;  %vm171_vm2 = vcmp.lt.s32.totalorder %v165_v7, 16 }
  0x41   : > { %vm613_vm3 = vmand %vm169_vm1, %vm171_vm2  ;;  %p432_p0 = por %p431_p10, %p430_p8 }
  0x42   : > { %vm168_vm4 = vcmp.lt.s32.totalorder %v166_v11, 8  ;;  %vm170_vm5 = vcmp.ge.s32.totalorder %v166_v11, 8  ;;  %vm172_vm6 = vcmp.lt.s32.totalorder %v166_v11, 16  ;;  %v179_v16 = vsel %vm613_vm3, 0.0, %v175_v8 }
  0x43   : > { %vm174_vm7 = vmand %vm170_vm5, %vm172_vm6  ;;  %v186_v17 = vsel %vm167_vm0, %v326_v9, %v179_v16  ;;  %v201_v18 = vsel %vm613_vm3, %v175_v8, %v326_v9  ;;  %v224_v19 = vsel %vm613_vm3, %v326_v9, %v328_v10  ;;  %p433_p2 = pnand %p432_p0, %p426_p13 }
  0x44   : > { %v180_v20 = vsel %vm174_vm7, 0.0, %v177_v13  ;;  %v202_v21 = vsel %vm174_vm7, %v177_v13, %v184_v14  ;;  %v208_v22 = vsel %vm167_vm0, %v328_v10, %v201_v18  ;;  %v225_v23 = vsel %vm174_vm7, %v184_v14, %v206_v15 }
  0x45   : > { %v187_v24 = vsel %vm168_vm4, %v184_v14, %v180_v20  ;;  %v209_v25 = vsel %vm168_vm4, %v206_v15, %v202_v21  ;;  %v226_v26 = vsel %vm167_vm0, 0.0, %v224_v19  ;;  %v227_v27 = vsel %vm168_vm4, 0.0, %v225_v23 }
  0x46   : > { %v190_v28 = vcombine.low %v186_v17, %v187_v24  ;;  %v212_v29 = vcombine.low %v208_v22, %v209_v25  ;;  %v230_v30 = vcombine.low %v226_v26, %v227_v27 }
  0x48   : > { %192 = vst [vmem:[%s134_s16] sm:$0xff] %v190_v28  ;;  %329 = vst [vmem:[%s134_s16 + $0x8] sm:$0xff] %v212_v29 }
  0x49   : > { %332 = vst [vmem:[%s134_s16 + $0x10] sm:$0xff] %v230_v30 }
  0x4a   : > { %436 = shalt.err (!%p433_p2)
}
  0x4b   : > { %s437_s11 = scalar_lea.hbm %s635_s28, 384  ;;  %s441_s19 = scalar_lea.hbm %s680_s1, 768 }
  0x4c   : > { %p438_p4 = scmp.ne.s32.totalorder %s635_s28, %s437_s11  ;;  %p442_p9 = scmp.lt.u32.totalorder %s635_s28, %s680_s1 }
  0x4d   : > { %p443_p1 = scmp.lt.u32.totalorder %s441_s19, %s437_s11  ;;  %p445_p6 = scmp.lt.u32.totalorder %s437_s11, %s635_s28 }
  0x4e   : > { %p439_p5 = pnand %p438_p4, %p688_p11 }
  0x4f   : > { %p444_p3 = por %p443_p1, %p442_p9 }
  0x50   : > { %p440_p7 = pneg %p439_p5 }
  0x51   : > { %p446_p12 = por %p445_p6, %p444_p3 }
  0x53   : > { %p447_p13 = pnand %p446_p12, %p440_p7 }
  0x55   : > { %450 = shalt.err (!%p447_p13)
}
  0x56   : > { %s495_s23 = smov 128   ;;  %s496_s26 = smov 8  }
  0x57   : > { %342 = dma.vmem_to_hbm [thread:$0]  (%p688_p11), %s627_s24, 384, %s635_s28, %s235_s30, %s495_s23, %s495_s23, %s496_s26  }
  0x58 PF: > { %s263_s29 = sand.u32 1, %s477_s6   ;;  %p689_p8 = scmp.ne.s32.totalorder %s684_s18, 0 }
  0x59   : > { %p690_p10 = scmp.ge.s32.totalorder %s489_s9, 2  ;;  %s264_s16 = scalar_lea.sflag [#allocation4], %s263_s29 }
  0x5b   : > { %p349_p0 = pnand %p690_p10, %p689_p8 }
  0x5d   : > { %472 = dma.done.wait (!%p349_p0), %s264_s16, 384  }
  0x5e   : > { %474 = vsyncadd (!%p349_p0), %s264_s16, 4294966912  ;;  %p14_p2 = scmp.ge.s32.totalorder %s532_s12, 4   ;;  %s691_s6 = smov %s481_s7 }
  0x5f   : > { %s692_s7 = smov %s485_s8  ;;  %s693_s8 = smov %s544_s15 }
  0x60   : > { %s694_s9 = smov %s532_s12  ;;  %16 = sbr.rel (!%p14_p2) target bundleno = 5 (0x5), region = 73 }
  0x67   :  { %269 = vsyncpa [#allocation3], 1 }
  0x68   :  { %271 = vsyncpa [#allocation3 + $0x1], 1 }
  0x69   :  { %272 = vsyncpa [#allocation4], 1 }
  0x6a   :  { %274 = vsyncpa [#allocation4 + $0x1], 1 }

</bundles_post_ra>
